<compile_context>
chip_gen: v6e
topology: v6e:2x2x1
jax: 0.10.0
libtpu: 0.0.40
codegen_flags: <defaults>
</compile_context>

<pallas_src>
import jax
import jax.numpy as jnp
from jax.experimental import pallas as pl
from jax.experimental.pallas import tpu as pltpu


def _round_up(x, m):
    return ((x + m - 1) // m) * m


# ---------------------------------------------------------------------------
# Parameter folding (done ONCE, outside the per-forward path)
# ---------------------------------------------------------------------------
def fold_cond_encoder_params(w_conv, b_conv, w_lin, b_lin, *, lane_pad=128):
    """Fold Conv1d(3->22, k=1) + Linear(396->latent) into one (54->latent) affine map.

    Layout: input rows are the flattened (3, 18) sparse features, index c*18 + l,
    matching torch's reshape(bs, seq, 3, 18).flatten(0, 1).  The conv output is
    reshaped row-major to 396 with index o*18 + l, matching reshape(bs, seq, -1).

      y[d] = sum_{o,l} W_lin[d, o*18+l] * (sum_c W_conv[o,c] * x[c*18+l] + b_conv[o]) + b_lin[d]
           = sum_{c,l} W_comb[c*18+l, d] * x[c*18+l] + b_comb[d]

    Returns (W_comb_padded (54, P), b_comb_padded (1, P)) with P = lane-dense width.
    """
    latent_dim = w_lin.shape[0]
    w_lin_r = w_lin.reshape(latent_dim, 22, 18)                    # (d, o, l)
    # W_comb[c*18+l, d] = sum_o W_conv[o, c] * W_lin[d, o*18+l]
    w_comb = jnp.einsum("oc,dol->cld", w_conv, w_lin_r).reshape(54, latent_dim)
    # b_comb[d] = sum_{o,l} b_conv[o] * W_lin[d, o*18+l] + b_lin[d]
    b_comb = jnp.einsum("o,dol->d", b_conv, w_lin_r) + b_lin

    latent_pad = _round_up(max(latent_dim, lane_pad), lane_pad)
    w_comb_p = jnp.pad(w_comb, ((0, 0), (0, latent_pad - latent_dim)))
    b_comb_p = jnp.pad(b_comb.reshape(1, latent_dim),
                       ((0, 0), (0, latent_pad - latent_dim)))
    return w_comb_p.astype(jnp.float32), b_comb_p.astype(jnp.float32), latent_dim


# ---------------------------------------------------------------------------
# Kernel: fused (conv1x1 + linear) == single matmul + bias, lane-dense output
# ---------------------------------------------------------------------------
def cond_encoder_kernel(x_ref, w_ref, b_ref, out_ref):
    # x_ref  : (tm, 54)
    # w_ref  : (54, latent_pad)   folded weight (zero-padded to 128 lanes)
    # b_ref  : (1, latent_pad)
    # out_ref: (tm, latent_pad)
    out_ref[...] = (
        jnp.dot(x_ref[...], w_ref[...], preferred_element_type=jnp.float32)
        + b_ref[...]
    )


def control_md_cond_encoder(sparse, w_comb_p, b_comb_p, latent_dim, *, tm=None):
    """sparse: (bs, seq, 54) f32 -> cond: (bs, seq, latent_dim) f32."""
    bs, seq, feat = sparse.shape
    assert feat == 54
    latent_pad = w_comb_p.shape[1]
    rows = bs * seq

    # Large MXU-friendly row tiles; pad rows instead of asserting divisibility.
    if tm is None:
        tm = min(512, _round_up(rows, 128))
    rows_pad = _round_up(rows, tm)

    x = sparse.reshape(rows, feat)
    if rows_pad != rows:
        x = jnp.pad(x, ((0, rows_pad - rows), (0, 0)))

    out = pl.pallas_call(
        cond_encoder_kernel,
        out_shape=jax.ShapeDtypeStruct((rows_pad, latent_pad), jnp.float32),
        grid=(rows_pad // tm,),
        in_specs=[
            pl.BlockSpec((tm, feat), lambda i: (i, 0)),
            pl.BlockSpec((feat, latent_pad), lambda i: (0, 0)),
            pl.BlockSpec((1, latent_pad), lambda i: (0, 0)),
        ],
        out_specs=pl.BlockSpec((tm, latent_pad), lambda i: (i, 0)),
        compiler_params=pltpu.CompilerParams(dimension_semantics=("parallel",)),
    )(x, w_comb_p, b_comb_p)

    return out[:rows, :latent_dim].reshape(bs, seq, latent_dim)


# ---------------------------------------------------------------------------
# scheduler.add_noise (DDPM): tiny elementwise op -> plain JAX (XLA fuses it);
# a standalone Pallas call costs more in dispatch than the math itself.
# ---------------------------------------------------------------------------
def ddpm_add_noise(motion_latents, noise, timesteps, alphas_cumprod):
    """motion_latents, noise: (bs, 1, e_dim); timesteps: (bs,) int32."""
    ac = alphas_cumprod[timesteps].astype(jnp.float32)
    sa = jnp.sqrt(ac).reshape(-1, 1, 1)
    s1ma = jnp.sqrt(1.0 - ac).reshape(-1, 1, 1)
    return sa * motion_latents + s1ma * noise


# ---------------------------------------------------------------------------
# Pure-JAX reference of the UNfused torch path (for a sanity check)
# ---------------------------------------------------------------------------
def cond_encoder_ref(sparse, w_conv, b_conv, w_lin, b_lin):
    bs, seq, _ = sparse.shape
    x = sparse.reshape(bs * seq, 3, 18)
    inter = jnp.einsum("ncl,oc->nol", x, w_conv) + b_conv[None, :, None]
    inter = inter.reshape(bs, seq, 396)
    return inter @ w_lin.T + b_lin


if __name__ == "__main__":
    key = jax.random.PRNGKey(0)
    bs, seq = 2, 8
    latent_dim = 32
    e_dim = 32
    num_train_timesteps = 1000

    k = jax.random.split(key, 8)
    # Inputs (ControlMD.forward): sparse (bs, seq, 3*18), motion_latents (bs, 1, e_dim)
    sparse = jax.random.normal(k[0], (bs, seq, 54), dtype=jnp.float32)
    motion_latents = jax.random.normal(k[1], (bs, 1, e_dim), dtype=jnp.float32)

    # Parameters (shapes from __init__):
    #   cond_encoder  = nn.Conv1d(3, 22, 1)  -> weight (22, 3, 1), bias (22,)
    #   cond_encoder2 = nn.Linear(396, latent_dim) -> weight (latent_dim, 396), bias (latent_dim,)
    w_conv = 0.1 * jax.random.normal(k[2], (22, 3), dtype=jnp.float32)
    b_conv = 0.1 * jax.random.normal(k[3], (22,), dtype=jnp.float32)
    w_lin = 0.05 * jax.random.normal(k[4], (latent_dim, 396), dtype=jnp.float32)
    b_lin = 0.05 * jax.random.normal(k[5], (latent_dim,), dtype=jnp.float32)

    # ---- fold weights ONCE (parameter-load time) ----
    w_comb_p, b_comb_p, latent_dim = fold_cond_encoder_params(
        w_conv, b_conv, w_lin, b_lin
    )

    # ---- cond path (single Pallas matmul kernel) ----
    cond = control_md_cond_encoder(sparse, w_comb_p, b_comb_p, latent_dim)

    # ---- diffusion noising path (plain JAX; trivially fused by XLA) ----
    noise = jax.random.normal(k[6], motion_latents.shape, dtype=jnp.float32)
    timesteps = jax.random.randint(k[7], (bs,), 0, num_train_timesteps)
    betas = jnp.linspace(1e-4, 0.02, num_train_timesteps, dtype=jnp.float32)
    alphas_cumprod = jnp.cumprod(1.0 - betas)
    noisy_motion_latents = ddpm_add_noise(
        motion_latents, noise, timesteps, alphas_cumprod
    )

    # TODO(synk): control_feat = self.control_net(...) and motion_pred = self.denoiser(...)
    # are instantiate_from_config modules with no provided definition; not translated.

    cond, noisy_motion_latents = jax.block_until_ready((cond, noisy_motion_latents))

    # Sanity checks (fold changes f32 accumulation order slightly -> loose tol).
    cond_ref = cond_encoder_ref(sparse, w_conv, b_conv, w_lin, b_lin)
    assert cond.shape == (bs, seq, latent_dim)
    assert noisy_motion_latents.shape == (bs, 1, e_dim)
    assert jnp.allclose(cond, cond_ref, atol=1e-2, rtol=1e-2)

    sa = jnp.sqrt(alphas_cumprod[timesteps]).reshape(bs, 1, 1)
    s1ma = jnp.sqrt(1.0 - alphas_cumprod[timesteps]).reshape(bs, 1, 1)
    noisy_ref = sa * motion_latents + s1ma * noise
    assert jnp.allclose(noisy_motion_latents, noisy_ref, atol=1e-5, rtol=1e-5)

    print("KERNEL_OK")
</pallas_src>

<mosaic_0001>
module attributes {stable_mosaic.version = 11 : i64} {
  func.func @cond_encoder_kernel(%arg0: i32, %arg1: memref<128x54xf32, #tpu.memory_space<vmem>>, %arg2: memref<54x128xf32, #tpu.memory_space<vmem>>, %arg3: memref<1x128xf32, #tpu.memory_space<vmem>>, %arg4: memref<128x128xf32, #tpu.memory_space<vmem>>) attributes {dimension_semantics = [#tpu.dimension_semantics<parallel>], iteration_bounds = array<i64: 1>, scalar_prefetch = 0 : i64, scratch_operands = 0 : i64, tpu.core_type = #tpu.core_type<tc>, window_params = [{transform_indices = @transform_0, window_bounds = array<i64: 128, 54>}, {pipeline_mode = #tpu.pipeline_mode<synchronous>, transform_indices = @transform_1, window_bounds = array<i64: 54, 128>}, {pipeline_mode = #tpu.pipeline_mode<synchronous>, transform_indices = @transform_2, window_bounds = array<i64: 1, 128>}, {transform_indices = @transform_3, window_bounds = array<i64: 128, 128>}]} {
    %c0 = arith.constant 0 : index
    %c0_0 = arith.constant 0 : index
    %0 = vector.load %arg1[%c0, %c0_0] : memref<128x54xf32, #tpu.memory_space<vmem>>, vector<128x54xf32>
    %c0_1 = arith.constant 0 : index
    %c0_2 = arith.constant 0 : index
    %1 = vector.load %arg2[%c0_1, %c0_2] : memref<54x128xf32, #tpu.memory_space<vmem>>, vector<54x128xf32>
    %cst = arith.constant dense<0.000000e+00> : vector<128x128xf32>
    %2 = tpu.matmul %0, %1, %cst {dimension_numbers = #tpu.dot_dimension_numbers<[1], [0], [0], [1], [0, 0, 1, 1], [], []>} : vector<128x54xf32>, vector<54x128xf32>, vector<128x128xf32> -> vector<128x128xf32>
    %c0_3 = arith.constant 0 : index
    %c0_4 = arith.constant 0 : index
    %3 = vector.load %arg3[%c0_3, %c0_4] : memref<1x128xf32, #tpu.memory_space<vmem>>, vector<1x128xf32>
    %4 = vector.broadcast %3 : vector<1x128xf32> to vector<128x128xf32>
    %5 = arith.addf %2, %4 : vector<128x128xf32>
    %c0_5 = arith.constant 0 : index
    %c0_6 = arith.constant 0 : index
    %6 = vector.load %arg4[%c0_5, %c0_6] : memref<128x128xf32, #tpu.memory_space<vmem>>, vector<128x128xf32>
    tpu.vector_store %arg4[%c0_5, %c0_6], %5 {strides = array<i32>} : memref<128x128xf32, #tpu.memory_space<vmem>>, vector<128x128xf32>,
    return
  }
  func.func @transform_0(%arg0: i32) -> (i32, i32) {
    %c0_i32 = arith.constant 0 : i32
    %c0_i32_0 = arith.constant 0 : i32
    return %arg0, %c0_i32 : i32, i32
  }
  func.func @transform_1(%arg0: i32) -> (i32, i32) {
    %c0_i32 = arith.constant 0 : i32
    %c0_i32_0 = arith.constant 0 : i32
    %c0_i32_1 = arith.constant 0 : i32
    return %c0_i32, %c0_i32_0 : i32, i32
  }
  func.func @transform_2(%arg0: i32) -> (i32, i32) {
    %c0_i32 = arith.constant 0 : i32
    %c0_i32_0 = arith.constant 0 : i32
    %c0_i32_1 = arith.constant 0 : i32
    return %c0_i32, %c0_i32_0 : i32, i32
  }
  func.func @transform_3(%arg0: i32) -> (i32, i32) {
    %c0_i32 = arith.constant 0 : i32
    %c0_i32_0 = arith.constant 0 : i32
    return %arg0, %c0_i32 : i32, i32
  }
}

</mosaic_0001>

<bundles_post_ra>
// kernel: tpu_custom_call.1
= control target key start
LH: loop header
LB: loop body
LE: loop exit
PB: predicated region body
PF: predicated region fallthrough
CT: control target
= control target key end

     0   :  { %vm94_vm0 = vcmask 1045504   ;;  %s507_s0 = inlined_call_operand.vmem [shape: f32[128,54], index: 0, kind: input, shape index: {}]   ;;  %s508_s1 = inlined_call_operand.vmem [shape: f32[54,128], index: 1, kind: input, shape index: {}]   ;;  %s509_s2 = inlined_call_operand.vmem [shape: f32[1,128], index: 2, kind: input, shape index: {}]   ;;  %s510_s3 = inlined_call_operand.hbm [shape: f32[128,128], index: 3, kind: output, shape index: {}]  }
   0x1   :  { %v37_v0 = vld [vmem:[%s508_s1 + $0x30] sm:$0x3f]  ;;  %v36_v1 = vld [vmem:[%s508_s1 + $0x28] sm:$0xff]  ;;  %v35_v2 = vld [vmem:[%s508_s1 + $0x20] sm:$0xff] }
   0x2   :  { %316 = vmatprep.subr.msk.mxu0 %vm94_vm0, %v37_v0  ;;  %354 = vmatprep.subr.msk.mxu1 %vm94_vm0, %v37_v0  ;;  %v34_v3 = vld [vmem:[%s508_s1 + $0x18] sm:$0xff]  ;;  %v33_v4 = vld [vmem:[%s508_s1 + $0x10] sm:$0xff] }
   0x3   :  { %317 = vmatpush3.msk.msra.mxu0 %vm94_vm0, %v37_v0  ;;  %361 = vmatpush3.msk.msra.mxu1 %vm94_vm0, %v37_v0 }
   0x4   :  { %318 = vmatprep.subr.mxu0 %v36_v1  ;;  %355 = vmatprep.subr.mxu1 %v36_v1 }
   0x5   :  { %319 = vmatpush3.msra.mxu0 %v36_v1  ;;  %362 = vmatpush3.msra.mxu1 %v36_v1 }
   0x6   :  { %320 = vmatprep.subr.mxu0 %v35_v2  ;;  %356 = vmatprep.subr.mxu1 %v35_v2 }
   0x7   :  { %321 = vmatpush3.msra.mxu0 %v35_v2  ;;  %363 = vmatpush3.msra.mxu1 %v35_v2 }
   0x8   :  { %322 = vmatprep.subr.mxu0 %v34_v3  ;;  %357 = vmatprep.subr.mxu1 %v34_v3 }
   0x9   :  { %8 = vsyncpa [#allocation3], 0  ;;  %323 = vmatpush3.msra.mxu0 %v34_v3  ;;  %364 = vmatpush3.msra.mxu1 %v34_v3  ;;  %v32_v5 = vld [vmem:[%s508_s1 + $0x8] sm:$0xff]  ;;  %v31_v6 = vld [vmem:[%s508_s1] sm:$0xff]  ;;  %vm45_vm1 = vcmask 441344  }
   0xa   :  { %324 = vmatprep.subr.mxu0 %v33_v4  ;;  %358 = vmatprep.subr.mxu1 %v33_v4  ;;  %v15_v7 = vld [vmem:[%s507_s0] sm:$0xff]  ;;  %v16_v9 = vld [vmem:[%s507_s0 + $0x8] sm:$0xff]  ;;  %v17_v11 = vld [vmem:[%s507_s0 + $0x10] sm:$0xff] }
   0xb   :  { %325 = vmatpush3.msra.mxu0 %v33_v4  ;;  %365 = vmatpush3.msra.mxu1 %v33_v4  ;;  %v23_v8 = vld [vmem:[%s507_s0 + $0x40] sm:$0xff]  ;;  %v24_v10 = vld [vmem:[%s507_s0 + $0x48] sm:$0xff]  ;;  %v25_v12 = vld [vmem:[%s507_s0 + $0x50] sm:$0xff] }
   0xc   :  { %326 = vmatprep.subr.mxu0 %v32_v5  ;;  %359 = vmatprep.subr.mxu1 %v32_v5  ;;  %v18_v13 = vld [vmem:[%s507_s0 + $0x18] sm:$0xff]  ;;  %v19_v15 = vld [vmem:[%s507_s0 + $0x20] sm:$0xff]  ;;  %v20_v17 = vld [vmem:[%s507_s0 + $0x28] sm:$0xff] }
   0xd   :  { %327 = vmatpush3.msra.mxu0 %v32_v5  ;;  %366 = vmatpush3.msra.mxu1 %v32_v5  ;;  %v26_v14 = vld [vmem:[%s507_s0 + $0x58] sm:$0xff]  ;;  %v27_v16 = vld [vmem:[%s507_s0 + $0x60] sm:$0xff]  ;;  %v28_v18 = vld [vmem:[%s507_s0 + $0x68] sm:$0xff] }
   0xe   :  { %328 = vmatprep.subr.mxu0 %v31_v6  ;;  %360 = vmatprep.subr.mxu1 %v31_v6  ;;  %v21_v19 = vld [vmem:[%s507_s0 + $0x30] sm:$0xff]  ;;  %v22_v21 = vld [vmem:[%s507_s0 + $0x38] sm:$0xff]  ;;  %v275_v23 = vld [vmem:[%s509_s2] ss:$0 sm:$0xff] }
   0xf   :  { %329 = vmatpush3.msra.mxu0 %v31_v6  ;;  %367 = vmatpush3.msra.mxu1 %v31_v6  ;;  %v29_v20 = vld [vmem:[%s507_s0 + $0x70] sm:$0xff]  ;;  %v30_v22 = vld [vmem:[%s507_s0 + $0x78] sm:$0xff]  ;;  %s393_s0 = smov [#allocation2]  }
  0x10   :  { %330 = vmatprep.mubr.msk.f32.mxu0 %vm45_vm1, %v15_v7  ;;  %342 = vmatprep.mubr.msk.f32.mxu1 %vm45_vm1, %v23_v8  ;;  %s264_s2 = sshll.u32 %s393_s0, 4  ;;  %s265_s2 = int_to_ptr.vmem [resolvable:$true] %s264_s2 }
  0x11   :  { %331 = vmatmul.mubr.msk.f32.vlgmr.msra.gmra.mxu0 %vm45_vm1, %v16_v9  ;;  %343 = vmatmul.mubr.msk.f32.vlgmr.msra.gmra.mxu1 %vm45_vm1, %v24_v10  ;;  %s371_s1 = scalar_lea.vmem %s265_s2, 2048  ;;  %p376_p1 = scmp.lt.s32.totalorder %s265_s2, %s265_s2 }
  0x12   :  { %333 = vmatprep.mubr.msk.f32.mxu0 %vm45_vm1, %v17_v11  ;;  %345 = vmatprep.mubr.msk.f32.mxu1 %vm45_vm1, %v25_v12  ;;  %p372_p0 = scmp.ne.s32.totalorder %s265_s2, %s371_s1  ;;  %p377_p2 = scmp.lt.s32.totalorder %s371_s1, %s371_s1 }
  0x14   :  { %p378_p3 = por %p377_p2, %p376_p1 }
  0x15   :  { %334 = vmatmul.mubr.msk.f32.gmra.mxu0 %vm45_vm1, %v18_v13  ;;  %346 = vmatmul.mubr.msk.f32.gmra.mxu1 %vm45_vm1, %v26_v14 }
  0x16   :  { %336 = vmatprep.mubr.msk.f32.mxu0 %vm45_vm1, %v19_v15  ;;  %348 = vmatprep.mubr.msk.f32.mxu1 %vm45_vm1, %v27_v16  ;;  %p379_p4 = pnand %p378_p3, %p372_p0 }
  0x19   :  { %337 = vmatmul.mubr.msk.f32.gmra.mxu0 %vm45_vm1, %v20_v17  ;;  %349 = vmatmul.mubr.msk.f32.gmra.mxu1 %vm45_vm1, %v28_v18 }
  0x1a   :  { %339 = vmatprep.mubr.msk.f32.mxu0 %vm45_vm1, %v21_v19  ;;  %351 = vmatprep.mubr.msk.f32.mxu1 %vm45_vm1, %v29_v20 }
  0x1d   :  { %340 = vmatmul.mubr.msk.f32.gmra.mxu0 %vm45_vm1, %v22_v21  ;;  %352 = vmatmul.mubr.msk.f32.gmra.mxu1 %vm45_vm1, %v30_v22 }
  0xd1   :  { %v332_v24 = vpop.f32.mrf.mxu0  ;;  %v344_v25 = vpop.f32.mrf.mxu1 }
  0xd2   :  { %v170_v26 = vadd.f32 %v332_v24, %v275_v23  ;;  %v210_v27 = vadd.f32 %v344_v25, %v275_v23 }
  0xd3   :  { %v164_v28 = vpop.f32.mrf.mxu0  ;;  %v204_v29 = vpop.f32.mrf.mxu1 }
  0xd4   :  { %244 = vst [vmem:[#allocation2 + $0x8] sm:$0xff] %v170_v26  ;;  %252 = vst [vmem:[#allocation2 + $0x48] sm:$0xff] %v210_v27  ;;  %v165_v30 = vadd.f32 %v275_v23, %v164_v28  ;;  %v205_v31 = vadd.f32 %v275_v23, %v204_v29 }
  0xd5   :  { %v335_v32 = vpop.f32.mrf.mxu0  ;;  %v347_v33 = vpop.f32.mrf.mxu1 }
  0xd6   :  { %243 = vst [vmem:[#allocation2] sm:$0xff] %v165_v30  ;;  %251 = vst [vmem:[#allocation2 + $0x40] sm:$0xff] %v205_v31  ;;  %v180_v34 = vadd.f32 %v335_v32, %v275_v23  ;;  %v220_v35 = vadd.f32 %v347_v33, %v275_v23 }
  0xd7   :  { %v174_v36 = vpop.f32.mrf.mxu0  ;;  %v214_v37 = vpop.f32.mrf.mxu1 }
  0xd8   :  { %246 = vst [vmem:[#allocation2 + $0x18] sm:$0xff] %v180_v34  ;;  %254 = vst [vmem:[#allocation2 + $0x58] sm:$0xff] %v220_v35  ;;  %v175_v38 = vadd.f32 %v275_v23, %v174_v36  ;;  %v215_v39 = vadd.f32 %v275_v23, %v214_v37 }
  0xd9   :  { %v338_v40 = vpop.f32.mrf.mxu0  ;;  %v350_v41 = vpop.f32.mrf.mxu1 }
  0xda   :  { %245 = vst [vmem:[#allocation2 + $0x10] sm:$0xff] %v175_v38  ;;  %253 = vst [vmem:[#allocation2 + $0x50] sm:$0xff] %v215_v39  ;;  %v190_v42 = vadd.f32 %v338_v40, %v275_v23  ;;  %v230_v43 = vadd.f32 %v350_v41, %v275_v23 }
  0xdb   :  { %v184_v44 = vpop.f32.mrf.mxu0  ;;  %v224_v45 = vpop.f32.mrf.mxu1 }
  0xdc   :  { %248 = vst [vmem:[#allocation2 + $0x28] sm:$0xff] %v190_v42  ;;  %256 = vst [vmem:[#allocation2 + $0x68] sm:$0xff] %v230_v43  ;;  %v185_v46 = vadd.f32 %v275_v23, %v184_v44  ;;  %v225_v47 = vadd.f32 %v275_v23, %v224_v45 }
  0xdd   :  { %v341_v48 = vpop.f32.mrf.mxu0  ;;  %v353_v49 = vpop.f32.mrf.mxu1 }
  0xde   :  { %247 = vst [vmem:[#allocation2 + $0x20] sm:$0xff] %v185_v46  ;;  %255 = vst [vmem:[#allocation2 + $0x60] sm:$0xff] %v225_v47  ;;  %v200_v50 = vadd.f32 %v341_v48, %v275_v23  ;;  %v240_v51 = vadd.f32 %v353_v49, %v275_v23 }
  0xdf   :  { %v194_v52 = vpop.f32.mrf.mxu0  ;;  %v234_v53 = vpop.f32.mrf.mxu1 }
  0xe0   :  { %250 = vst [vmem:[#allocation2 + $0x38] sm:$0xff] %v200_v50  ;;  %258 = vst [vmem:[#allocation2 + $0x78] sm:$0xff] %v240_v51  ;;  %v195_v54 = vadd.f32 %v275_v23, %v194_v52  ;;  %v235_v55 = vadd.f32 %v275_v23, %v234_v53 }
  0xe2   :  { %249 = vst [vmem:[#allocation2 + $0x30] sm:$0xff] %v195_v54  ;;  %257 = vst [vmem:[#allocation2 + $0x70] sm:$0xff] %v235_v55 }
  0xe3   :  { %382 = shalt.err (!%p379_p4)
}
  0xe4   :  { %s394_s5 = smov 128   ;;  %s395_s6 = smov 8  }
  0xe5   :  { %270 = dma.vmem_to_hbm [thread:$0]  %s265_s2, 2048, %s510_s3, [#allocation3], %s394_s5, %s394_s5, %s395_s6  }
  0xe6   :  { %391 = dma.done.wait [#allocation3], 2048  }
  0xe7   :  { %392 = vsyncadd [#allocation3], 4294965248 }
  0xe8   :  { %274 = vsyncpa [#allocation3], 1 }

</bundles_post_ra>
